<compile_context>
chip_gen: v7x
topology: tpu7x:2x2x1
jax: 0.10.0
libtpu: 0.0.40
codegen_flags: <defaults>
</compile_context>

<pallas_src>
import jax
import jax.numpy as jnp
from jax.experimental import pallas as pl
from jax.experimental.pallas import tpu as pltpu


def _nse_loss_kernel(w_ref, y_pred_ref, y_true_ref, out_ref):
    # w_ref: (TB, 1) f32 per-sample weights.  y_pred/y_true: (TB, TL) native dtype.
    d = y_pred_ref[...].astype(jnp.float32) - y_true_ref[...].astype(jnp.float32)
    out_ref[...] = w_ref[...] * d * d


def _round_up(x, m):
    return ((x + m - 1) // m) * m


def _vmem_budget():
    """Generation-aware (per-array block cap, scoped VMEM limit) in bytes."""
    try:
        cap = int(pltpu.get_tpu_info().vmem_capacity_bytes)
    except Exception:
        cap = 64 * 1024 * 1024  # conservative (v7x-sized) fallback
    if cap >= 100 * 1024 * 1024:
        # v5e / v6e: 128 MiB physical VMEM.  Worst case f32: 3 arrays x 2 bufs x 8 MiB = 48 MiB.
        return 8 * 1024 * 1024, 64 * 1024 * 1024
    # v7x: 64 MiB physical VMEM.  Worst case f32: 3 x 2 x 4 MiB = 24 MiB.
    return 4 * 1024 * 1024, 48 * 1024 * 1024


def _choose_tiles(B, SF, max_elems):
    """Pick (tb, tl) with tb*tl <= max_elems and legal block shapes:
    last dim is a multiple of 128 OR the full extent; second-to-last dim is a
    multiple of 8 OR the full extent.  Partial boundary blocks are allowed
    (Pallas masks them), so the cap is enforced for ANY (B, SF)."""
    # Lane (last) dim: prefer the full extent (keeps stores unmasked) if it
    # fits with >= 8 sublanes; otherwise a 128-aligned slice.
    lane_cap = max(128, ((max_elems // 8) // 128) * 128)
    if SF <= lane_cap:
        tl = SF                       # full extent: legal even if not 128-aligned
    else:
        tl = lane_cap                 # multiple of 128; trailing block masked if needed

    # Sublane (batch) dim.
    tb_max = max(8, max_elems // max(tl, 1))
    if B <= tb_max:
        tb = B                        # full extent: legal for any B
    else:
        tb = max(8, (tb_max // 8) * 8)  # multiple of 8; trailing block masked if needed

    # Megacore / pipelining: guarantee >= 2 grid blocks along one "parallel"
    # axis so both TensorCores (v7x) can work and the pipeline has >1 step.
    if pl.cdiv(B, tb) * pl.cdiv(SF, tl) == 1:
        if SF >= 256:
            tl = min(tl, _round_up(pl.cdiv(SF, 2), 128))
        elif B >= 16:
            tb = min(tb, _round_up(pl.cdiv(B, 2), 8))
    return tb, tl


def nse_loss(y_pred, y_true, q_stds, eps: float = 1e-05,
             max_block_bytes=None, vmem_limit_bytes=None):
    """Batch-wise NSE loss: weights.reshape(-1,1,1) * (y_pred - y_true)**2."""
    assert y_pred.shape == y_true.shape and y_pred.ndim == 3
    B, S, F = y_pred.shape
    assert q_stds.shape == (B,)
    SF = S * F

    default_block_bytes, default_vmem_limit = _vmem_budget()
    if max_block_bytes is None:
        max_block_bytes = default_block_bytes
    if vmem_limit_bytes is None:
        vmem_limit_bytes = default_vmem_limit
    # Cap is sized for the largest per-element array (the f32 output block).
    max_elems = max(1024, max_block_bytes // 4)

    # Per-sample weights, computed once outside the kernel (f32, matches PyTorch
    # promotion: f32 weights * inputs -> f32 result).
    weights = (1.0 / (q_stds.astype(jnp.float32) + jnp.float32(eps)) ** 2).reshape(B, 1)

    # Lane-dense 2D view; reshape of a contiguous array is free.
    yp2 = y_pred.reshape(B, SF)
    yt2 = y_true.reshape(B, SF)

    tb, tl = _choose_tiles(B, SF, max_elems)
    grid = (pl.cdiv(B, tb), pl.cdiv(SF, tl))

    out2 = pl.pallas_call(
        _nse_loss_kernel,
        out_shape=jax.ShapeDtypeStruct((B, SF), jnp.float32),
        grid_spec=pl.GridSpec(
            grid=grid,
            in_specs=[
                pl.BlockSpec((tb, 1), lambda i, j: (i, 0)),    # weights (f32)
                pl.BlockSpec((tb, tl), lambda i, j: (i, j)),   # y_pred (native dtype)
                pl.BlockSpec((tb, tl), lambda i, j: (i, j)),   # y_true (native dtype)
            ],
            out_specs=pl.BlockSpec((tb, tl), lambda i, j: (i, j)),
        ),
        compiler_params=pltpu.CompilerParams(
            dimension_semantics=("parallel", "parallel"),
            vmem_limit_bytes=vmem_limit_bytes,
        ),
    )(weights, yp2, yt2)

    return out2.reshape(B, S, F)


def nse_loss_ref(y_pred, y_true, q_stds, eps: float = 1e-05):
    squared_error = (y_pred.astype(jnp.float32) - y_true.astype(jnp.float32)) ** 2
    weights = 1.0 / (q_stds.astype(jnp.float32) + eps) ** 2
    return weights.reshape(-1, 1, 1) * squared_error


if __name__ == "__main__":
    # Test 1: small f32 case (module-implied shapes); single block gets split
    # along the lane axis for megacore.
    k1, k2, k3 = jax.random.split(jax.random.PRNGKey(0), 3)
    B, S, F = 2, 8, 32
    y_pred = jax.random.normal(k1, (B, S, F), dtype=jnp.float32)
    y_true = jax.random.normal(k2, (B, S, F), dtype=jnp.float32)
    q_stds = jax.random.uniform(k3, (B,), dtype=jnp.float32, minval=0.1, maxval=2.0)
    out = jax.block_until_ready(nse_loss(y_pred, y_true, q_stds))
    exp = nse_loss_ref(y_pred, y_true, q_stds)
    assert out.shape == (B, S, F)
    assert jnp.allclose(out, exp, rtol=1e-5, atol=1e-5), "f32 mismatch vs reference"

    # Test 2: bf16 inputs (exercises in-kernel cast; f32 output per PyTorch promotion).
    k4, k5, k6 = jax.random.split(jax.random.PRNGKey(1), 3)
    B2, S2, F2 = 8, 16, 256
    y_pred2 = jax.random.normal(k4, (B2, S2, F2), dtype=jnp.bfloat16)
    y_true2 = jax.random.normal(k5, (B2, S2, F2), dtype=jnp.bfloat16)
    q_stds2 = jax.random.uniform(k6, (B2,), dtype=jnp.float32, minval=0.1, maxval=2.0)
    out2 = jax.block_until_ready(nse_loss(y_pred2, y_true2, q_stds2))
    exp2 = nse_loss_ref(y_pred2, y_true2, q_stds2)
    assert out2.shape == (B2, S2, F2)
    assert jnp.allclose(out2, exp2, rtol=1e-5, atol=1e-5), "bf16 mismatch vs reference"

    # Test 3: unaligned B and S*F with a forced-tiny block budget, exercising
    # the 8/128-aligned partial-boundary-block path in _choose_tiles.
    k7, k8, k9 = jax.random.split(jax.random.PRNGKey(2), 3)
    B3, S3, F3 = 10, 4, 75   # SF = 300 (not 128-aligned), B not 8-aligned
    y_pred3 = jax.random.normal(k7, (B3, S3, F3), dtype=jnp.float32)
    y_true3 = jax.random.normal(k8, (B3, S3, F3), dtype=jnp.float32)
    q_stds3 = jax.random.uniform(k9, (B3,), dtype=jnp.float32, minval=0.1, maxval=2.0)
    out3 = jax.block_until_ready(
        nse_loss(y_pred3, y_true3, q_stds3, max_block_bytes=4096))
    exp3 = nse_loss_ref(y_pred3, y_true3, q_stds3)
    assert out3.shape == (B3, S3, F3)
    assert jnp.allclose(out3, exp3, rtol=1e-5, atol=1e-5), "unaligned mismatch vs reference"

    print("KERNEL_OK")
</pallas_src>

<mosaic_0001>
module attributes {stable_mosaic.version = 11 : i64} {
  func.func @_nse_loss_kernel(%arg0: i32, %arg1: i32, %arg2: memref<2x1xf32, #tpu.memory_space<vmem>>, %arg3: memref<2x128xf32, #tpu.memory_space<vmem>>, %arg4: memref<2x128xf32, #tpu.memory_space<vmem>>, %arg5: memref<2x128xf32, #tpu.memory_space<vmem>>) attributes {dimension_semantics = [#tpu.dimension_semantics<parallel>, #tpu.dimension_semantics<parallel>], iteration_bounds = array<i64: 1, 2>, scalar_prefetch = 0 : i64, scratch_operands = 0 : i64, tpu.core_type = #tpu.core_type<tc>, window_params = [{transform_indices = @transform_0, window_bounds = array<i64: 2, 1>}, {transform_indices = @transform_1, window_bounds = array<i64: 2, 128>}, {transform_indices = @transform_2, window_bounds = array<i64: 2, 128>}, {transform_indices = @transform_3, window_bounds = array<i64: 2, 128>}]} {
    %c0 = arith.constant 0 : index
    %c0_0 = arith.constant 0 : index
    %0 = vector.load %arg3[%c0, %c0_0] : memref<2x128xf32, #tpu.memory_space<vmem>>, vector<2x128xf32>
    %c0_1 = arith.constant 0 : index
    %c0_2 = arith.constant 0 : index
    %1 = vector.load %arg4[%c0_1, %c0_2] : memref<2x128xf32, #tpu.memory_space<vmem>>, vector<2x128xf32>
    %2 = arith.subf %0, %1 : vector<2x128xf32>
    %c0_3 = arith.constant 0 : index
    %c0_4 = arith.constant 0 : index
    %3 = vector.load %arg2[%c0_3, %c0_4] : memref<2x1xf32, #tpu.memory_space<vmem>>, vector<2x1xf32>
    %4 = vector.broadcast %3 : vector<2x1xf32> to vector<2x128xf32>
    %5 = arith.mulf %4, %2 : vector<2x128xf32>
    %6 = arith.mulf %5, %2 : vector<2x128xf32>
    %c0_5 = arith.constant 0 : index
    %c0_6 = arith.constant 0 : index
    %7 = vector.load %arg5[%c0_5, %c0_6] : memref<2x128xf32, #tpu.memory_space<vmem>>, vector<2x128xf32>
    tpu.vector_store %arg5[%c0_5, %c0_6], %6 {strides = array<i32>} : memref<2x128xf32, #tpu.memory_space<vmem>>, vector<2x128xf32>,
    return
  }
  func.func @transform_0(%arg0: i32, %arg1: i32) -> (i32, i32) {
    %c0_i32 = arith.constant 0 : i32
    %c0_i32_0 = arith.constant 0 : i32
    return %arg0, %c0_i32 : i32, i32
  }
  func.func @transform_1(%arg0: i32, %arg1: i32) -> (i32, i32) {
    %c0_i32 = arith.constant 0 : i32
    return %arg0, %arg1 : i32, i32
  }
  func.func @transform_2(%arg0: i32, %arg1: i32) -> (i32, i32) {
    %c0_i32 = arith.constant 0 : i32
    return %arg0, %arg1 : i32, i32
  }
  func.func @transform_3(%arg0: i32, %arg1: i32) -> (i32, i32) {
    %c0_i32 = arith.constant 0 : i32
    return %arg0, %arg1 : i32, i32
  }
}

</mosaic_0001>

<bundles_post_ra>
// kernel: tpu_custom_call.1
= control target key start
LH: loop header
LB: loop body
LE: loop exit
PB: predicated region body
PF: predicated region fallthrough
CT: control target
= control target key end

     0   :  { %8 = vsyncpa [#allocation3], 0  ;;  %s668_s0 = inlined_call_operand.vmem [shape: f32[2,1], index: 0, kind: input, shape index: {}]   ;;  %s669_s1 = inlined_call_operand.vmem [shape: f32[2,256], index: 1, kind: input, shape index: {}]   ;;  %s670_s2 = inlined_call_operand.vmem [shape: f32[2,256], index: 2, kind: input, shape index: {}]   ;;  %s671_s3 = inlined_call_operand.hbm [shape: f32[2,256], index: 3, kind: output, shape index: {}]  }
   0x1   :  { %10 = vsyncpa [#allocation3 + $0x1], 0  ;;  %s550_s12 = smov 0   ;;  %s552_s13 = smov 0  }
   0x2   :  { %s554_s14 = smov 0   ;;  %s556_s15 = smov 0  }
   0x3   :  { %s558_s16 = smov 0   ;;  %s560_s17 = smov 0  }
   0x4 LB: > { %s378_s18 = sadd.s32 4294967295, %s526_s17   ;;  %s379_s19 = sadd.s32 4294967294, %s526_s17   ;;  %s526_s17 = sphi %s560_s17, %s16_s17   ;;  %s522_s16 = sphi %s558_s16, %s678_s16   ;;  %s518_s15 = sphi %s556_s15, %s677_s15   ;;  %s514_s14 = sphi %s554_s14, %s676_s14   ;;  %s510_s13 = sphi %s552_s13, %s675_s13   ;;  %s506_s12 = sphi %s550_s12, %s674_s12  }
   0x5   : > { %s25_s20 = sadd.s32 1, %s522_s16  ;;  %s119_s21 = sadd.s32 1, %s514_s14 }
   0x6   : > { %p26_p0 = scmp.ge.s32.totalorder %s25_s20, 2  ;;  %p129_p1 = scmp.ne.s32.totalorder %s514_s14, %s510_s13 }
   0x7   : > { %p130_p2 = scmp.eq.s32.totalorder %s378_s18, 1  ;;  %p135_p3 = scmp.ne.s32.totalorder %s510_s13, %s506_s12 }
   0x8   : > { %s680_s20 = smov (%p26_p0, %s25_s20), 0  ;;  %p136_p5 = scmp.eq.s32.totalorder %s379_s19, 1 }
   0x9   : > { %p590_p4 = por %p130_p2, %p129_p1  ;;  %s115_s23 = ssub.s32 %s522_s16, %s680_s20 }
   0xa   : > { %p383_p6 = scmp.ge.s32.totalorder %s526_s17, 1  ;;  %p117_p7 = scmp.eq.s32.totalorder %s115_s23, 0 }
   0xb   : > { %p597_p8 = por %p136_p5, %p135_p3  ;;  %p183_p9 = scmp.lt.s32.totalorder %s526_s17, 3 }
   0xc   : > { %s603_s25 = scalar_select %p117_p7, %s514_s14, %s119_s21  }
   0xd   : > { %p184_p10 = pnand %p383_p6, %p183_p9 }
   0xe   : > { %v245_v0 = vld [vmem:[%s668_s0] sm:$0x3] (!%p184_p10)  ;;  %v528_v1 = vmov (!%p184_p10), 0   ;;  %p228_p11 = scmp.lt.s32.totalorder (!%p184_p10), %s518_s15, 1  ;;  %s219_s30 = sand.u32 (!%p184_p10), 1, %s510_s13  }
   0xf   : > { %187 = sbr.rel (%p184_p10) target bundleno = 162 (0xa2), region = 32  ;;  %447 = vset.pattern.permute.xlu0 (!%p184_p10), %v528_v1  ;;  %s384_s10 = sshll.u32 (!%p184_p10), %s219_s30, 1 }
  0x10   : > { %248 = vperm.xlu0 (!%p184_p10), %447, %v245_v0   ;;  %s388_s11 = sshll.u32 (!%p184_p10), %s518_s15, 5  ;;  %s221_s18 = scalar_lea.vmem (!%p184_p10), [#allocation2], %s384_s10 }
  0x11   : > { %s270_s19 = sshll.u32 (!%p184_p10), %s221_s18, 4  ;;  %s621_s26 = scalar_lea.hbm (!%p184_p10), %s671_s3, %s388_s11  ;;  %s623_s19 = int_to_ptr.vmem [resolvable:$true] %s270_s19 }
  0x12   : > { %s255_s27 = scalar_lea.sflag (!%p184_p10), [#allocation3], %s219_s30 }
  0x16   : > { %s229_s28 = scalar_select %p228_p11, %s518_s15, 1 }
  0x17   : > { %s529_s15 = smov [#allocation2]  }
  0x18   : > { %s385_s29 = sshll.u32 %s229_s28, 1  ;;  %s448_s28 = scalar_lea.vmem %s623_s19, 32 }
  0x19   : > { %s233_s6 = scalar_lea.vmem %s669_s1, %s385_s29  ;;  %s241_s9 = scalar_lea.vmem %s670_s2, %s385_s29 }
  0x1a   : > { %v242_v2 = vld [vmem:[%s233_s6] sm:$0x3]  ;;  %p449_p12 = scmp.ne.s32.totalorder %s623_s19, %s448_s28  ;;  %s452_s29 = sshll.u32 %s529_s15, 4  ;;  %s453_s29 = int_to_ptr.vmem [resolvable:$false] %s452_s29 }
  0x1b   : > { %v243_v3 = vld [vmem:[%s241_s9] sm:$0x3]  ;;  %s454_s4 = scalar_lea.vmem %s453_s29, 64  ;;  %p455_p1 = scmp.lt.s32.totalorder %s623_s19, %s453_s29 }
  0x1c   : > { %v244_v4 = vsub.f32 %v242_v2, %v243_v3  ;;  %p450_p13 = pnand %p449_p12, %p590_p4  ;;  %p456_p2 = scmp.lt.s32.totalorder %s454_s4, %s448_s28 }
  0x1e   : > { %p451_p0 = pneg %p450_p13  ;;  %p457_p3 = por %p456_p2, %p455_p1 }
  0x20   : > { %p458_p5 = pnand %p457_p3, %p451_p0 }
  0x8f   : > { %v249_v5 = vpop.permute.xlu0 %248 }
  0x90   : > { %v251_v6 = vmul.f32 %v249_v5, %v244_v4 }
  0x92   : > { %v252_v7 = vmul.f32 %v251_v6, %v244_v4 }
  0x94   : > { %253 = vst [vmem:[%s221_s18] sm:$0x3] %v252_v7 }
  0x95   : > { %461 = shalt.err (!%p458_p5)
}
  0x96   : > { %s462_s30 = scalar_lea.hbm %s621_s26, 32  ;;  %s466_s7 = scalar_lea.hbm %s671_s3, 64 }
  0x97   : > { %p463_p6 = scmp.ne.s32.totalorder %s621_s26, %s462_s30  ;;  %p467_p10 = scmp.lt.u32.totalorder %s621_s26, %s671_s3 }
  0x98   : > { %p468_p11 = scmp.lt.u32.totalorder %s466_s7, %s462_s30  ;;  %p470_p13 = scmp.lt.u32.totalorder %s462_s30, %s621_s26 }
  0x99   : > { %p464_p7 = pnand %p463_p6, %p590_p4 }
  0x9a   : > { %p469_p12 = por %p468_p11, %p467_p10 }
  0x9b   : > { %p465_p9 = pneg %p464_p7 }
  0x9c   : > { %p471_p0 = por %p470_p13, %p469_p12 }
  0x9e   : > { %p472_p1 = pnand %p471_p0, %p465_p9 }
  0xa0   : > { %475 = shalt.err (!%p472_p1)
}
  0xa1   : > { %391 = dma.vmem_to_hbm [thread:$0]  (%p590_p4), %s623_s19, 32, %s621_s26, %s255_s27  }
  0xa2 PF: > { %p397_p2 = scmp.ge.s32.totalorder %s526_s17, 2  ;;  %s282_s10 = sand.u32 1, %s506_s12  }
  0xa3   : > { %s283_s11 = scalar_lea.sflag [#allocation3], %s282_s10 }
  0xa4   : > { %p394_p3 = pnand %p397_p2, %p597_p8 }
  0xa6   : > { %501 = dma.done.wait (!%p394_p3), %s283_s11, 32  }
  0xa7   : > { %503 = vsyncadd (!%p394_p3), %s283_s11, 4294967264  ;;  %s16_s17 = sadd.s32 1, %s526_s17   ;;  %s674_s12 = smov %s510_s13 }
  0xa8   : > { %p13_p5 = scmp.ge.s32.totalorder %s16_s17, 4   ;;  %s675_s13 = smov %s514_s14 }
  0xa9   : > { %s676_s14 = smov %s603_s25  ;;  %s677_s15 = smov %s522_s16 }
  0xaa   : > { %s678_s16 = smov %s680_s20  ;;  %15 = sbr.rel (!%p13_p5) target bundleno = 4 (0x4), region = 73 }
  0xb1   :  { %288 = vsyncpa [#allocation3], 1 }
  0xb2   :  { %290 = vsyncpa [#allocation3 + $0x1], 1 }

</bundles_post_ra>
